<compile_context>
chip_gen: v6e
topology: v6e:2x2x1
jax: 0.10.0
libtpu: 0.0.40
codegen_flags: <defaults>
</compile_context>

<pallas_src>
import jax
import jax.numpy as jnp
from jax.experimental import pallas as pl
from jax.experimental.pallas import tpu as pltpu


def _round_up(x, m):
    return ((x + m - 1) // m) * m


# --------------------------------- kernels ----------------------------------

def _emit(o_ref, scores):
    """Store per-row scores lane-dense into a (1, 1, tb) output block."""
    o_ref[...] = scores.astype(jnp.float32).reshape(o_ref.shape)


def _linear_single_kernel(cell_ref, c_ref, w_ref, b_ref, o_ref):
    # output_type=0, scoring='linear': (Linear(cell) * cmp).sum(dim=1)
    proj = jnp.dot(cell_ref[...].astype(w_ref.dtype), w_ref[...],
                   preferred_element_type=jnp.float32) + b_ref[...]
    _emit(o_ref, jnp.sum(proj * c_ref[...], axis=1))


def _linear_diff_kernel(cell_ref, c1_ref, c2_ref, w_ref, b_ref, o_ref):
    # output_type=2, scoring='linear': (Linear(cell) * (cmp1 - cmp2)).sum(dim=1)
    proj = jnp.dot(cell_ref[...].astype(w_ref.dtype), w_ref[...],
                   preferred_element_type=jnp.float32) + b_ref[...]
    _emit(o_ref, jnp.sum(proj * (c1_ref[...] - c2_ref[...]), axis=1))


def _linear_dual_kernel(cell_ref, c1_ref, c2_ref, w_ref, b_ref, o1_ref, o2_ref):
    # output_type=1, scoring='linear': shared projection, two lane reduces.
    proj = jnp.dot(cell_ref[...].astype(w_ref.dtype), w_ref[...],
                   preferred_element_type=jnp.float32) + b_ref[...]
    _emit(o1_ref, jnp.sum(proj * c1_ref[...], axis=1))
    _emit(o2_ref, jnp.sum(proj * c2_ref[...], axis=1))


def _mlp_single_kernel(cell_ref, c_ref, w1a_ref, w1m_ref, b1_ref, w2_ref,
                       b2_ref, o_ref):
    # ffn(concat(cell, cmp)):  concat(cell,cmp) @ W1 == cell @ W1a + cmp @ W1m
    cd = w1a_ref.dtype
    h = (jnp.dot(cell_ref[...].astype(cd), w1a_ref[...],
                 preferred_element_type=jnp.float32)
         + jnp.dot(c_ref[...].astype(cd), w1m_ref[...],
                   preferred_element_type=jnp.float32)
         + b1_ref[...])
    h = jnp.maximum(h, 0.0)
    _emit(o_ref, jnp.sum(h * w2_ref[...], axis=1) + b2_ref[...])


def _mlp_dual_kernel(cell_ref, c1_ref, c2_ref, w1a_ref, w1m_ref, b1_ref,
                     w2_ref, b2_ref, o1_ref, o2_ref):
    # output_type=1, scoring='mlp': shared base = cell @ W1a + b1
    cd = w1a_ref.dtype
    base = jnp.dot(cell_ref[...].astype(cd), w1a_ref[...],
                   preferred_element_type=jnp.float32) + b1_ref[...]
    h1 = jnp.maximum(base + jnp.dot(c1_ref[...].astype(cd), w1m_ref[...],
                                    preferred_element_type=jnp.float32), 0.0)
    h2 = jnp.maximum(base + jnp.dot(c2_ref[...].astype(cd), w1m_ref[...],
                                    preferred_element_type=jnp.float32), 0.0)
    w2 = w2_ref[...]
    _emit(o1_ref, jnp.sum(h1 * w2, axis=1) + b2_ref[...])
    _emit(o2_ref, jnp.sum(h2 * w2, axis=1) + b2_ref[...])


def _mlp_pair_kernel(cell_ref, c1_ref, c2_ref, w1a_ref, w1m_ref, b1_ref,
                     w2_ref, o_ref):
    # output_type=2, scoring='mlp': ffn(cat(cell,cmp1)) - ffn(cat(cell,cmp2)).
    # b2 cancels exactly in the difference and is omitted.
    cd = w1a_ref.dtype
    base = jnp.dot(cell_ref[...].astype(cd), w1a_ref[...],
                   preferred_element_type=jnp.float32) + b1_ref[...]
    h1 = jnp.maximum(base + jnp.dot(c1_ref[...].astype(cd), w1m_ref[...],
                                    preferred_element_type=jnp.float32), 0.0)
    h2 = jnp.maximum(base + jnp.dot(c2_ref[...].astype(cd), w1m_ref[...],
                                    preferred_element_type=jnp.float32), 0.0)
    _emit(o_ref, jnp.sum((h1 - h2) * w2_ref[...], axis=1))


def _mlp2_kernel(c_ref, w1_ref, b1_ref, w2_ref, b2_ref, o_ref):
    # scoring='mlp2' (update_emb == 'cell+list-attention2'): ffn(cmp1).squeeze()
    h = jnp.maximum(jnp.dot(c_ref[...].astype(w1_ref.dtype), w1_ref[...],
                            preferred_element_type=jnp.float32) + b1_ref[...],
                    0.0)
    _emit(o_ref, jnp.sum(h * w2_ref[...], axis=1) + b2_ref[...])


# ----------------------------- pallas_call glue ------------------------------

def _run(kernel, batch_inputs, const_inputs, n_out, tile_batch):
    """Batch-tiled launch.

    Batch inputs get (tb, feat) blocks along a single 'parallel' grid axis
    (ragged last block handled by Pallas masking — no host-side padding);
    weights/biases use constant index maps so they stay VMEM-resident; outputs
    are lane-dense (num_tiles, 1, tb) slabs.
    """
    B = batch_inputs[0].shape[0]
    assert all(x.ndim == 2 and x.shape[0] == B for x in batch_inputs)

    # Lane-friendly tile, never larger than the 8-padded batch.
    tb = min(_round_up(int(tile_batch), 128), _round_up(B, 8))
    num_tiles = pl.cdiv(B, tb)

    in_specs = ([pl.BlockSpec((tb, x.shape[1]), lambda i: (i, 0))
                 for x in batch_inputs]
                + [pl.BlockSpec(x.shape, lambda i: (0, 0))
                   for x in const_inputs])

    out_specs = [pl.BlockSpec((1, 1, tb), lambda i: (i, 0, 0))
                 for _ in range(n_out)]
    out_shapes = [jax.ShapeDtypeStruct((num_tiles, 1, tb), jnp.float32)
                  for _ in range(n_out)]

    # VMEM budget estimate (double-buffered, lane/sublane padded). Only raise
    # the scoped limit when we would exceed v5e's 16 MiB default; cap at
    # 64 MiB so the request is also valid on v7x (64 MiB physical per core).
    vmem_est = 0
    for x in batch_inputs:
        vmem_est += 2 * tb * _round_up(x.shape[1], 128) * x.dtype.itemsize
    for x in const_inputs:
        vmem_est += (2 * _round_up(x.shape[0], 8)
                     * _round_up(x.shape[1], 128) * x.dtype.itemsize)
    vmem_est += n_out * 2 * 8 * tb * 4
    vmem_limit = None
    if vmem_est > 12 * (1 << 20):
        vmem_limit = int(min(max(2 * vmem_est, 48 * (1 << 20)), 64 * (1 << 20)))

    # Advisory cost estimate (the kernel is HBM-byte / step-overhead bound).
    matmul_w_elems = sum(int(x.size) for x in const_inputs if x.shape[0] > 1)
    flops = 2 * B * max(matmul_w_elems, 1)
    bytes_accessed = (sum(int(x.size) * x.dtype.itemsize for x in batch_inputs)
                      + sum(int(x.size) * x.dtype.itemsize for x in const_inputs)
                      + n_out * int(num_tiles) * tb * 4)

    outs = pl.pallas_call(
        kernel,
        grid=(num_tiles,),
        in_specs=in_specs,
        out_specs=out_specs if n_out > 1 else out_specs[0],
        out_shape=out_shapes if n_out > 1 else out_shapes[0],
        compiler_params=pltpu.CompilerParams(
            dimension_semantics=("parallel",),
            vmem_limit_bytes=vmem_limit),
        cost_estimate=pl.CostEstimate(flops=int(flops), transcendentals=0,
                                      bytes_accessed=int(bytes_accessed)),
    )(*batch_inputs, *const_inputs)

    if n_out == 1:
        return outs.reshape(-1)[:B]
    return tuple(o.reshape(-1)[:B] for o in outs)


# ------------------------------ module wrapper --------------------------------

class ScoringPallas:
    """JAX/Pallas port of `Scoring` (src/models/ranknet.py)."""

    def __init__(self, key, scoring, ae_out_size, mol_out_size, hidden=25,
                 compute_dtype=jnp.bfloat16, tile_batch=2048):
        self.scoring = scoring
        self.tile_batch = tile_batch
        k = jax.random.split(key, 4)
        if scoring == 'linear':
            # nn.Linear(ae_out_size, mol_out_size), stored as x @ W
            self.w = (jax.random.normal(k[0], (ae_out_size, mol_out_size),
                                        jnp.float32) * 0.1).astype(compute_dtype)
            self.b = jax.random.normal(k[1], (1, mol_out_size), jnp.float32) * 0.1
        elif scoring == 'mlp':
            # MLP(in=mol+ae, hidden=25, num_layers=2, out=1)
            # TODO(synk): torch_geometric's default MLP inserts BatchNorm between
            # layers; implemented here as plain Linear -> ReLU -> Linear (norm=None).
            in_ch = mol_out_size + ae_out_size
            w1 = jax.random.normal(k[0], (in_ch, hidden), jnp.float32) * 0.1
            self.w1a = w1[:ae_out_size].astype(compute_dtype)   # rows hit by cell_emb
            self.w1m = w1[ae_out_size:].astype(compute_dtype)   # rows hit by cmp_emb
            self.b1 = jax.random.normal(k[1], (1, hidden), jnp.float32) * 0.1
            self.w2_row = jax.random.normal(k[2], (1, hidden), jnp.float32) * 0.1
            self.b2 = jax.random.normal(k[3], (1, 1), jnp.float32) * 0.1
        elif scoring == 'mlp2':
            # MLP(in=mol_out_size, hidden=25, num_layers=2, out=1)
            self.w1 = (jax.random.normal(k[0], (mol_out_size, hidden),
                                         jnp.float32) * 0.1).astype(compute_dtype)
            self.b1 = jax.random.normal(k[1], (1, hidden), jnp.float32) * 0.1
            self.w2_row = jax.random.normal(k[2], (1, hidden), jnp.float32) * 0.1
            self.b2 = jax.random.normal(k[3], (1, 1), jnp.float32) * 0.1
        else:
            raise ValueError(scoring)

    def __call__(self, cell_emb, cmp1_emb, cmp2_emb=None, output_type=2):
        tb = self.tile_batch

        if self.scoring == 'linear':
            if output_type == 2:
                return _run(_linear_diff_kernel, [cell_emb, cmp1_emb, cmp2_emb],
                            [self.w, self.b], 1, tb)
            if output_type == 1:
                return _run(_linear_dual_kernel, [cell_emb, cmp1_emb, cmp2_emb],
                            [self.w, self.b], 2, tb)
            return _run(_linear_single_kernel, [cell_emb, cmp1_emb],
                        [self.w, self.b], 1, tb)

        if self.scoring == 'mlp':
            if output_type == 2:
                return _run(_mlp_pair_kernel, [cell_emb, cmp1_emb, cmp2_emb],
                            [self.w1a, self.w1m, self.b1, self.w2_row], 1, tb)
            if output_type == 1:
                return _run(_mlp_dual_kernel, [cell_emb, cmp1_emb, cmp2_emb],
                            [self.w1a, self.w1m, self.b1, self.w2_row, self.b2],
                            2, tb)
            return _run(_mlp_single_kernel, [cell_emb, cmp1_emb],
                        [self.w1a, self.w1m, self.b1, self.w2_row, self.b2], 1, tb)

        # 'mlp2' -- only reachable with output_type == 0 in the PyTorch code.
        return _run(_mlp2_kernel, [cmp1_emb],
                    [self.w1, self.b1, self.w2_row, self.b2], 1, tb)


# ------------------------------ reference + demo ------------------------------

if __name__ == "__main__":
    key = jax.random.PRNGKey(0)
    B, AE, MOL = 8, 32, 16   # batch, args.ae_out_size, args.mol_out_size

    k_cell, k_c1, k_c2, k_lin, k_mlp, k_big = jax.random.split(key, 6)
    cell = jax.random.normal(k_cell, (B, AE), jnp.float32)
    c1 = jax.random.normal(k_c1, (B, MOL), jnp.float32)
    c2 = jax.random.normal(k_c2, (B, MOL), jnp.float32)

    f32 = lambda x: x.astype(jnp.float32)
    # Kernels cast the matmul operands to bf16 (f32 accumulate); mirror that in
    # the reference so the comparison is tight.
    rd = lambda x: x.astype(jnp.bfloat16).astype(jnp.float32)

    def ref_linear(cc, c, w, b):
        return jnp.sum((rd(cc) @ f32(w) + b) * c, axis=1)

    def ref_linear_diff(cc, ca, cb, w, b):
        return jnp.sum((rd(cc) @ f32(w) + b) * (ca - cb), axis=1)

    def ref_mlp(cc, c, w1a, w1m, b1, w2_row, b2):
        h = jnp.maximum(rd(cc) @ f32(w1a) + rd(c) @ f32(w1m) + b1, 0.0)
        return jnp.sum(h * w2_row, axis=1) + b2[0, 0]

    def ref_mlp2(c, w1, b1, w2_row, b2):
        h = jnp.maximum(rd(c) @ f32(w1) + b1, 0.0)
        return jnp.sum(h * w2_row, axis=1) + b2[0, 0]

    ok = True
    TOL = dict(rtol=2e-3, atol=2e-3)

    # --- scoring='linear' ---
    lin = ScoringPallas(k_lin, 'linear', AE, MOL)
    out2 = jax.block_until_ready(lin(cell, c1, c2, output_type=2))
    ok &= out2.shape == (B,)
    ok &= bool(jnp.allclose(out2, ref_linear_diff(cell, c1, c2, lin.w, lin.b), **TOL))

    s1, s2 = lin(cell, c1, c2, output_type=1)
    jax.block_until_ready((s1, s2))
    ok &= bool(jnp.allclose(s1, ref_linear(cell, c1, lin.w, lin.b), **TOL))
    ok &= bool(jnp.allclose(s2, ref_linear(cell, c2, lin.w, lin.b), **TOL))

    out0 = jax.block_until_ready(lin(cell, c1, output_type=0))
    ok &= bool(jnp.allclose(out0, ref_linear(cell, c1, lin.w, lin.b), **TOL))

    # --- multi-tile grid path (ragged last block, no host-side padding) ---
    lin_big = ScoringPallas(k_lin, 'linear', AE, MOL, tile_batch=256)
    Bb = 1000
    kb1, kb2, kb3 = jax.random.split(k_big, 3)
    cell_b = jax.random.normal(kb1, (Bb, AE), jnp.float32)
    c1_b = jax.random.normal(kb2, (Bb, MOL), jnp.float32)
    c2_b = jax.random.normal(kb3, (Bb, MOL), jnp.float32)
    outb = jax.block_until_ready(lin_big(cell_b, c1_b, c2_b, output_type=2))
    ok &= outb.shape == (Bb,)
    ok &= bool(jnp.allclose(outb,
                            ref_linear_diff(cell_b, c1_b, c2_b, lin_big.w, lin_big.b),
                            **TOL))

    # --- scoring='mlp' ---
    mlp = ScoringPallas(k_mlp, 'mlp', AE, MOL)
    mref1 = ref_mlp(cell, c1, mlp.w1a, mlp.w1m, mlp.b1, mlp.w2_row, mlp.b2)
    mref2 = ref_mlp(cell, c2, mlp.w1a, mlp.w1m, mlp.b1, mlp.w2_row, mlp.b2)

    mout2 = jax.block_until_ready(mlp(cell, c1, c2, output_type=2))
    ok &= bool(jnp.allclose(mout2, mref1 - mref2, **TOL))

    ms1, ms2 = mlp(cell, c1, c2, output_type=1)
    jax.block_until_ready((ms1, ms2))
    ok &= bool(jnp.allclose(ms1, mref1, **TOL))
    ok &= bool(jnp.allclose(ms2, mref2, **TOL))

    mout0 = jax.block_until_ready(mlp(cell, c1, output_type=0))
    ok &= bool(jnp.allclose(mout0, mref1, **TOL))

    # --- scoring='mlp2' (update_emb == 'cell+list-attention2') ---
    mlp2 = ScoringPallas(jax.random.PRNGKey(7), 'mlp2', AE, MOL)
    m2out = jax.block_until_ready(mlp2(None, c1, output_type=0))
    ok &= bool(jnp.allclose(m2out,
                            ref_mlp2(c1, mlp2.w1, mlp2.b1, mlp2.w2_row, mlp2.b2),
                            **TOL))

    if ok:
        print("KERNEL_OK")
    else:
        raise SystemExit("mismatch vs reference")
</pallas_src>

<mosaic_0001>
module attributes {stable_mosaic.version = 11 : i64} {
  func.func @_linear_diff_kernel(%arg0: i32, %arg1: memref<8x32xf32, #tpu.memory_space<vmem>>, %arg2: memref<8x16xf32, #tpu.memory_space<vmem>>, %arg3: memref<8x16xf32, #tpu.memory_space<vmem>>, %arg4: memref<32x16xbf16, #tpu.memory_space<vmem>>, %arg5: memref<1x16xf32, #tpu.memory_space<vmem>>, %arg6: memref<1x1x8xf32, #tpu.memory_space<vmem>>) attributes {dimension_semantics = [#tpu.dimension_semantics<parallel>], iteration_bounds = array<i64: 1>, scalar_prefetch = 0 : i64, scratch_operands = 0 : i64, tpu.core_type = #tpu.core_type<tc>, window_params = [{transform_indices = @transform_0, window_bounds = array<i64: 8, 32>}, {transform_indices = @transform_1, window_bounds = array<i64: 8, 16>}, {transform_indices = @transform_2, window_bounds = array<i64: 8, 16>}, {pipeline_mode = #tpu.pipeline_mode<synchronous>, transform_indices = @transform_3, window_bounds = array<i64: 32, 16>}, {pipeline_mode = #tpu.pipeline_mode<synchronous>, transform_indices = @transform_4, window_bounds = array<i64: 1, 16>}, {transform_indices = @transform_5, window_bounds = array<i64: 1, 1, 8>}]} {
    %c0 = arith.constant 0 : index
    %c0_0 = arith.constant 0 : index
    %0 = vector.load %arg1[%c0, %c0_0] : memref<8x32xf32, #tpu.memory_space<vmem>>, vector<8x32xf32>
    %1 = arith.truncf %0 : vector<8x32xf32> to vector<8x32xbf16>
    %c0_1 = arith.constant 0 : index
    %c0_2 = arith.constant 0 : index
    %2 = vector.load %arg4[%c0_1, %c0_2] : memref<32x16xbf16, #tpu.memory_space<vmem>>, vector<32x16xbf16>
    %cst = arith.constant dense<0.000000e+00> : vector<8x16xf32>
    %3 = tpu.matmul %1, %2, %cst {dimension_numbers = #tpu.dot_dimension_numbers<[1], [0], [0], [1], [0, 0, 1, 1], [], []>} : vector<8x32xbf16>, vector<32x16xbf16>, vector<8x16xf32> -> vector<8x16xf32>
    %c0_3 = arith.constant 0 : index
    %c0_4 = arith.constant 0 : index
    %4 = vector.load %arg5[%c0_3, %c0_4] : memref<1x16xf32, #tpu.memory_space<vmem>>, vector<1x16xf32>
    %5 = vector.broadcast %4 : vector<1x16xf32> to vector<8x16xf32>
    %6 = arith.addf %3, %5 : vector<8x16xf32>
    %c0_5 = arith.constant 0 : index
    %c0_6 = arith.constant 0 : index
    %7 = vector.load %arg2[%c0_5, %c0_6] : memref<8x16xf32, #tpu.memory_space<vmem>>, vector<8x16xf32>
    %c0_7 = arith.constant 0 : index
    %c0_8 = arith.constant 0 : index
    %8 = vector.load %arg3[%c0_7, %c0_8] : memref<8x16xf32, #tpu.memory_space<vmem>>, vector<8x16xf32>
    %9 = arith.subf %7, %8 : vector<8x16xf32>
    %10 = arith.mulf %6, %9 : vector<8x16xf32>
    %cst_9 = arith.constant dense<0.000000e+00> : vector<8xf32>
    %11 = vector.multi_reduction <add>, %10, %cst_9 [1] : vector<8x16xf32> to vector<8xf32>
    %12 = vector.shape_cast %11 : vector<8xf32> to vector<1x1x8xf32>
    %c0_10 = arith.constant 0 : index
    %c0_11 = arith.constant 0 : index
    %c0_12 = arith.constant 0 : index
    %13 = vector.load %arg6[%c0_10, %c0_11, %c0_12] : memref<1x1x8xf32, #tpu.memory_space<vmem>>, vector<1x1x8xf32>
    tpu.vector_store %arg6[%c0_10, %c0_11, %c0_12], %12 {strides = array<i32>} : memref<1x1x8xf32, #tpu.memory_space<vmem>>, vector<1x1x8xf32>,
    return
  }
  func.func @transform_0(%arg0: i32) -> (i32, i32) {
    %c0_i32 = arith.constant 0 : i32
    %c0_i32_0 = arith.constant 0 : i32
    return %arg0, %c0_i32 : i32, i32
  }
  func.func @transform_1(%arg0: i32) -> (i32, i32) {
    %c0_i32 = arith.constant 0 : i32
    %c0_i32_0 = arith.constant 0 : i32
    return %arg0, %c0_i32 : i32, i32
  }
  func.func @transform_2(%arg0: i32) -> (i32, i32) {
    %c0_i32 = arith.constant 0 : i32
    %c0_i32_0 = arith.constant 0 : i32
    return %arg0, %c0_i32 : i32, i32
  }
  func.func @transform_3(%arg0: i32) -> (i32, i32) {
    %c0_i32 = arith.constant 0 : i32
    %c0_i32_0 = arith.constant 0 : i32
    %c0_i32_1 = arith.constant 0 : i32
    return %c0_i32, %c0_i32_0 : i32, i32
  }
  func.func @transform_4(%arg0: i32) -> (i32, i32) {
    %c0_i32 = arith.constant 0 : i32
    %c0_i32_0 = arith.constant 0 : i32
    %c0_i32_1 = arith.constant 0 : i32
    return %c0_i32, %c0_i32_0 : i32, i32
  }
  func.func @transform_5(%arg0: i32) -> (i32, i32, i32) {
    %c0_i32 = arith.constant 0 : i32
    %c0_i32_0 = arith.constant 0 : i32
    %c0_i32_1 = arith.constant 0 : i32
    return %arg0, %c0_i32, %c0_i32_0 : i32, i32, i32
  }
}

</mosaic_0001>

<bundles_post_ra>
// kernel: tpu_custom_call.1
= control target key start
LH: loop header
LB: loop body
LE: loop exit
PB: predicated region body
PF: predicated region fallthrough
CT: control target
= control target key end

     0   :  { %v165_v1 = vmov 0.0   ;;  %vm166_vm0 = vmmov 0   ;;  %s219_s0 = inlined_call_operand.vmem [shape: f32[8,32], index: 0, kind: input, shape index: {}]   ;;  %s220_s1 = inlined_call_operand.vmem [shape: f32[8,16], index: 1, kind: input, shape index: {}]   ;;  %s221_s2 = inlined_call_operand.vmem [shape: f32[8,16], index: 2, kind: input, shape index: {}]   ;;  %s222_s3 = inlined_call_operand.vmem [shape: bf16[32,16], index: 3, kind: input, shape index: {}]   ;;  %s223_s4 = inlined_call_operand.vmem [shape: f32[1,16], index: 4, kind: input, shape index: {}]   ;;  %s224_s5 = inlined_call_operand.hbm [shape: f32[1,1,8], index: 5, kind: output, shape index: {}]  }
   0x1   :  { %v141_v0 = vld [vmem:[%s222_s3 + $0x8] sm:$0xff]   ;;  %130 = vmatprep.subr.bf16.mxu0 %v165_v1  ;;  %v142_v2 = vld [vmem:[%s222_s3] sm:$0xff]   ;;  %134 = vmatprep.mubr.msk.bf16.mxu0 %vm166_vm0, %v165_v1 }
   0x2   :  { %131 = vmatpush3.bf16.msra.mxu0 %v141_v0  ;;  %v22_v3 = vld [vmem:[%s219_s0] sm:$0xff] }
   0x3   :  { %10 = vsyncpa [#allocation3], 0  ;;  %132 = vmatprep.subr.bf16.mxu0 %v165_v1  ;;  %v23_v4 = vpack.c.bf16 %v22_v3, %v22_v3  ;;  %vm47_vm1 = vcmask 261120   ;;  %v91_v5 = vld [vmem:[%s220_s1] sm:$0xff]  ;;  %vm95_vm2 = vcmask 130048   ;;  %v100_v16 = vlaneseq  ;;  %s167_s0 = smov [#allocation2]  }
   0x4   :  { %v92_v6 = vld [vmem:[%s221_s2] sm:$0xff]  ;;  %s115_s1 = sshll.u32 %s167_s0, 4  ;;  %vm107_vm3 = vcmask 57344   ;;  %s116_s1 = int_to_ptr.vmem [resolvable:$true] %s115_s1 }
   0x5   :  { %v123_v7 = vld [vmem:[%s223_s4] ss:$0 sm:$0xff]  ;;  %v93_v8 = vsub.f32 %v91_v5, %v92_v6  ;;  %v101_v17 = vand.u32 127, %v100_v16  ;;  %v103_v18 = vshrl.u32 %v100_v16, 7  ;;  %s143_s2 = scalar_lea.vmem %s116_s1, 16  ;;  %s147_s4 = scalar_lea.vmem %s116_s1, 32 }
   0x6   :  { %133 = vmatpush3.bf16.msra.mxu0 %v142_v2  ;;  %p144_p0 = scmp.ne.s32.totalorder %s116_s1, %s143_s2  ;;  %p148_p1 = scmp.lt.s32.totalorder %s116_s1, %s116_s1 }
   0x7   :  { %v104_v19 = vsub.s32 %v101_v17, %v103_v18  ;;  %p149_p2 = scmp.lt.s32.totalorder %s147_s4, %s143_s2 }
   0x9   :  { %135 = vmatmul.mubr.msk.bf16.vlgmr.msra.gmra.mxu0 %vm47_vm1, %v23_v4  ;;  %p150_p3 = por %p149_p2, %p148_p1 }
   0xb   :  { %p151_p4 = pnand %p150_p3, %p144_p0 }
  0xc9   :  { %v85_v9 = vpop.f32.mrf.mxu0 }
  0xca   :  { %v86_v10 = vadd.f32 %v123_v7, %v85_v9 }
  0xcb   :  { %v136_v11 = vpop.f32.mrf.mxu0 }
  0xcc   :  { %v94_v12 = vmul.f32 %v93_v8, %v86_v10 }
  0xcd   :  { %v88_v13 = vpop.f32.mrf.mxu0 }
  0xce   :  { %v96_v14 = vsel %vm95_vm2, %v94_v12, 0.0 }
  0xcf   :  { %v137_v15 = vpop.f32.mrf.mxu0  ;;  %97 = vadd.xlane.f32.xlu0 %v96_v14 }
 0x158   :  { %v98_v20 = vpop.xlane.xlu0 %97 }
 0x159   :  { %v105_v21 = vrot.slane %v98_v20, %v104_v19 }
 0x15b   :  { %108 = vst.msk [vmem:[#allocation2] sm:$0x1] %vm107_vm3, %v105_v21 }
 0x15c   :  { %154 = shalt.err (!%p151_p4)
}
 0x15d   :  { %118 = dma.vmem_to_hbm [thread:$0]  %s116_s1, 16, %s224_s5, [#allocation3]  }
 0x15e   :  { %163 = dma.done.wait [#allocation3], 16  }
 0x15f   :  { %164 = vsyncadd [#allocation3], 4294967280 }
 0x160   :  { %122 = vsyncpa [#allocation3], 1 }

</bundles_post_ra>
